<compile_context>
chip_gen: v6e
topology: v6e:2x2x1
jax: 0.10.0
libtpu: 0.0.40
codegen_flags: <defaults>
</compile_context>

<pallas_src>
import functools

import jax
import jax.numpy as jnp
from jax.experimental import pallas as pl
from jax.experimental.pallas import tpu as pltpu


def _round_up(n, m):
    return ((n + m - 1) // m) * m


def _vae_kernel(training, *refs):
    if training:
        (x_ref, eps_ref,
         w1_ref, b1_ref, wmu_ref, bmu_ref, wlv_ref, blv_ref,
         w3_ref, b3_ref, w4_ref, b4_ref,
         xr_ref, mu_ref, lv_ref) = refs
    else:
        (x_ref,
         w1_ref, b1_ref, wmu_ref, bmu_ref, wlv_ref, blv_ref,
         w3_ref, b3_ref, w4_ref, b4_ref,
         xr_ref, mu_ref, lv_ref) = refs
        eps_ref = None

    cd = w1_ref.dtype  # matmul compute dtype (f32 or bf16); elementwise stays f32

    # ---- encoder: Linear(d_in, d_h) + ReLU ----
    h = jnp.dot(x_ref[...].astype(cd), w1_ref[...],
                preferred_element_type=jnp.float32)
    h = jnp.maximum(h + b1_ref[...], 0.0)
    hc = h.astype(cd)

    # ---- encoder head: two clean lane-aligned matmuls (no in-kernel slicing) ----
    mu = jnp.dot(hc, wmu_ref[...], preferred_element_type=jnp.float32) + bmu_ref[...]
    logvar = jnp.dot(hc, wlv_ref[...], preferred_element_type=jnp.float32) + blv_ref[...]

    # ---- reparameterise (f32 math on EUP/VPU) ----
    if training:
        z = mu + eps_ref[...] * jnp.exp(0.5 * logvar)
    else:
        z = mu

    # ---- decoder: Linear(d_z_pad, d_h) + ReLU ----
    hd = jnp.dot(z.astype(cd), w3_ref[...], preferred_element_type=jnp.float32)
    hd = jnp.maximum(hd + b3_ref[...], 0.0)

    # ---- decoder: Linear(d_h, d_in) + Sigmoid ----
    xr = jnp.dot(hd.astype(cd), w4_ref[...], preferred_element_type=jnp.float32)
    xr = jax.nn.sigmoid(xr + b4_ref[...])

    xr_ref[...] = xr.astype(xr_ref.dtype)
    mu_ref[...] = mu.astype(mu_ref.dtype)
    lv_ref[...] = logvar.astype(lv_ref.dtype)


def prepare_params(params, d_z, compute_dtype=jnp.float32):
    """One-time parameter preparation (transpose / split / pad / cast).

    Hoisted out of the forward call so per-step inference pays no transpose
    or padding cost.
    """
    w1, b1, w2, b2, w3, b3, w4, b4 = params
    d_z_pad = _round_up(d_z, 128)
    pad = d_z_pad - d_z

    w1t = w1.T.astype(compute_dtype)                         # (d_in, d_h)
    b1r = b1.reshape(1, -1).astype(jnp.float32)

    w2t = w2.T                                               # (d_h, 2*d_z)
    w_mu = jnp.pad(w2t[:, :d_z], ((0, 0), (0, pad))).astype(compute_dtype)
    w_lv = jnp.pad(w2t[:, d_z:], ((0, 0), (0, pad))).astype(compute_dtype)
    b_mu = jnp.pad(b2[:d_z], (0, pad)).reshape(1, -1).astype(jnp.float32)
    b_lv = jnp.pad(b2[d_z:], (0, pad)).reshape(1, -1).astype(jnp.float32)

    w3t = jnp.pad(w3.T, ((0, pad), (0, 0))).astype(compute_dtype)  # (d_z_pad, d_h)
    b3r = b3.reshape(1, -1).astype(jnp.float32)
    w4t = w4.T.astype(compute_dtype)                         # (d_h, d_in)
    b4r = b4.reshape(1, -1).astype(jnp.float32)

    return (w1t, b1r, w_mu, b_mu, w_lv, b_lv, w3t, b3r, w4t, b4r)


def vae_forward(x, eps, prep, *, d_z, training=True, tb=None):
    """x: (B, d_in) f32.  eps: (B, d_z) f32 (ignored / may be None if not training).

    prep: output of prepare_params.  Returns (xr, mu, logvar) in f32.
    """
    B, d_in = x.shape
    (w1t, b1r, w_mu, b_mu, w_lv, b_lv, w3t, b3r, w4t, b4r) = prep
    d_h = w1t.shape[1]
    d_z_pad = w_mu.shape[1]

    # Batch tile: >=128 rows feeds the MXU fully on real batches; clamp for
    # small demo batches (must stay a multiple of 8 sublanes).
    if tb is None:
        tb = 256
    tb = min(tb, _round_up(B, 8))
    tb = _round_up(tb, 8)
    b_pad = _round_up(B, tb)

    x_p = jnp.pad(x, ((0, b_pad - B), (0, 0))) if b_pad != B else x
    grid = (b_pad // tb,)

    def tile_spec(feat):
        return pl.BlockSpec((tb, feat), lambda i: (i, 0))

    def resident_spec(arr):
        return pl.BlockSpec(arr.shape, lambda i: (0, 0))

    weight_specs = [resident_spec(a) for a in prep]
    in_specs = [tile_spec(d_in)]
    args = [x_p]
    if training:
        eps_p = jnp.zeros((b_pad, d_z_pad), jnp.float32).at[:B, :d_z].set(eps)
        in_specs.append(tile_spec(d_z_pad))
        args.append(eps_p)
    in_specs += weight_specs
    args += list(prep)

    out_specs = (tile_spec(d_in), tile_spec(d_z_pad), tile_spec(d_z_pad))
    out_shape = (
        jax.ShapeDtypeStruct((b_pad, d_in), jnp.float32),     # xr
        jax.ShapeDtypeStruct((b_pad, d_z_pad), jnp.float32),  # mu (padded)
        jax.ShapeDtypeStruct((b_pad, d_z_pad), jnp.float32),  # logvar (padded)
    )

    # VMEM budget from the actual footprint (weights + double-buffered I/O
    # tiles + activation scratch) instead of a blanket 64 MiB.
    weight_bytes = sum(int(a.size) * a.dtype.itemsize for a in prep)
    io_tile_bytes = 4 * tb * (2 * d_in + 3 * d_z_pad + (d_z_pad if training else 0))
    scratch_bytes = 4 * tb * (2 * d_h + 2 * d_z_pad + d_in)
    vmem_limit = int(weight_bytes + 2 * io_tile_bytes + scratch_bytes + (4 << 20))

    kernel = functools.partial(_vae_kernel, training)

    xr, mu, lv = pl.pallas_call(
        kernel,
        grid=grid,
        out_shape=out_shape,
        in_specs=in_specs,
        out_specs=out_specs,
        compiler_params=pltpu.CompilerParams(
            dimension_semantics=("parallel",),   # v7x: shard batch tiles over 2 TCs
            vmem_limit_bytes=vmem_limit,
        ),
    )(*args)

    return xr[:B], mu[:B, :d_z], lv[:B, :d_z]


def init_params(key, d_in, d_z, d_h):
    """Deterministic synthetic parameters with PyTorch Linear weight shapes."""
    ks = jax.random.split(key, 8)

    def lin(kw, kb, out_f, in_f):
        bound = 1.0 / jnp.sqrt(in_f)
        w = jax.random.uniform(kw, (out_f, in_f), jnp.float32, -bound, bound)
        b = jax.random.uniform(kb, (out_f,), jnp.float32, -bound, bound)
        return w, b

    w1, b1 = lin(ks[0], ks[1], d_h, d_in)        # encoder[0]
    w2, b2 = lin(ks[2], ks[3], 2 * d_z, d_h)     # encoder[2]
    w3, b3 = lin(ks[4], ks[5], d_h, d_z)         # decoder[0]
    w4, b4 = lin(ks[6], ks[7], d_in, d_h)        # decoder[2]
    return (w1, b1, w2, b2, w3, b3, w4, b4)


def vae_forward_ref(x, eps, params, *, d_z, training=True):
    """Pure-JAX reference mirroring the PyTorch forward."""
    w1, b1, w2, b2, w3, b3, w4, b4 = params
    h = jnp.maximum(x @ w1.T + b1, 0.0)
    mu_logvar = (h @ w2.T + b2).reshape(-1, 2, d_z)
    mu, logvar = mu_logvar[:, 0, :], mu_logvar[:, 1, :]
    z = mu + eps * jnp.exp(0.5 * logvar) if training else mu
    hd = jnp.maximum(z @ w3.T + b3, 0.0)
    xr = jax.nn.sigmoid(hd @ w4.T + b4)
    return xr, mu, logvar


if __name__ == "__main__":
    # Small shapes consistent with the module's constructor args (d_in, d_z, d_h).
    # d_z=100 (module default) exercises the lane padding to 128.
    B, d_in, d_z, d_h = 24, 256, 100, 128

    key = jax.random.PRNGKey(0)
    k_x, k_eps, k_p = jax.random.split(key, 3)
    x = jax.random.normal(k_x, (B, d_in), jnp.float32)
    eps = jax.random.normal(k_eps, (B, d_z), jnp.float32)
    params = init_params(k_p, d_in, d_z, d_h)

    fwd = jax.jit(vae_forward, static_argnames=("d_z", "training", "tb"))

    # --- 1) f32 weights, training mode, small tile -> multi-step grid + batch pad ---
    prep_f32 = prepare_params(params, d_z, compute_dtype=jnp.float32)
    xr, mu, logvar = fwd(x, eps, prep_f32, d_z=d_z, training=True, tb=16)
    jax.block_until_ready((xr, mu, logvar))

    xr_r, mu_r, lv_r = vae_forward_ref(x, eps, params, d_z=d_z, training=True)
    assert jnp.allclose(xr, xr_r, atol=1e-5, rtol=1e-5)
    assert jnp.allclose(mu, mu_r, atol=1e-5, rtol=1e-5)
    assert jnp.allclose(logvar, lv_r, atol=1e-5, rtol=1e-5)

    # --- 2) eval mode: eps dropped from the kernel argument list ---
    xr_e, mu_e, lv_e = fwd(x, None, prep_f32, d_z=d_z, training=False)
    jax.block_until_ready((xr_e, mu_e, lv_e))
    xr_er, mu_er, lv_er = vae_forward_ref(x, eps, params, d_z=d_z, training=False)
    assert jnp.allclose(xr_e, xr_er, atol=1e-5, rtol=1e-5)
    assert jnp.allclose(mu_e, mu_er, atol=1e-5, rtol=1e-5)
    assert jnp.allclose(lv_e, lv_er, atol=1e-5, rtol=1e-5)

    # --- 3) bf16 matmul operands (v6e/v7x MXU rate, half the weight DMA) ---
    prep_bf16 = prepare_params(params, d_z, compute_dtype=jnp.bfloat16)
    xr_b, mu_b, lv_b = fwd(x, eps, prep_bf16, d_z=d_z, training=True)
    jax.block_until_ready((xr_b, mu_b, lv_b))
    assert jnp.allclose(xr_b, xr_r, atol=5e-2, rtol=5e-2)
    assert jnp.allclose(mu_b, mu_r, atol=5e-2, rtol=5e-2)
    assert jnp.allclose(lv_b, lv_r, atol=5e-2, rtol=5e-2)

    print("KERNEL_OK")
</pallas_src>

<mosaic_0001>
module attributes {stable_mosaic.version = 11 : i64} {
  func.func @_vae_kernel(%arg0: i32, %arg1: memref<16x256xf32, #tpu.memory_space<vmem>>, %arg2: memref<16x128xf32, #tpu.memory_space<vmem>>, %arg3: memref<256x128xf32, #tpu.memory_space<vmem>>, %arg4: memref<1x128xf32, #tpu.memory_space<vmem>>, %arg5: memref<128x128xf32, #tpu.memory_space<vmem>>, %arg6: memref<1x128xf32, #tpu.memory_space<vmem>>, %arg7: memref<128x128xf32, #tpu.memory_space<vmem>>, %arg8: memref<1x128xf32, #tpu.memory_space<vmem>>, %arg9: memref<128x128xf32, #tpu.memory_space<vmem>>, %arg10: memref<1x128xf32, #tpu.memory_space<vmem>>, %arg11: memref<128x256xf32, #tpu.memory_space<vmem>>, %arg12: memref<1x256xf32, #tpu.memory_space<vmem>>, %arg13: memref<16x256xf32, #tpu.memory_space<vmem>>, %arg14: memref<16x128xf32, #tpu.memory_space<vmem>>, %arg15: memref<16x128xf32, #tpu.memory_space<vmem>>) attributes {dimension_semantics = [#tpu.dimension_semantics<parallel>], iteration_bounds = array<i64: 2>, scalar_prefetch = 0 : i64, scratch_operands = 0 : i64, tpu.core_type = #tpu.core_type<tc>, window_params = [{transform_indices = @transform_0, window_bounds = array<i64: 16, 256>}, {transform_indices = @transform_1, window_bounds = array<i64: 16, 128>}, {pipeline_mode = #tpu.pipeline_mode<synchronous>, transform_indices = @transform_2, window_bounds = array<i64: 256, 128>}, {pipeline_mode = #tpu.pipeline_mode<synchronous>, transform_indices = @transform_3, window_bounds = array<i64: 1, 128>}, {pipeline_mode = #tpu.pipeline_mode<synchronous>, transform_indices = @transform_4, window_bounds = array<i64: 128, 128>}, {pipeline_mode = #tpu.pipeline_mode<synchronous>, transform_indices = @transform_5, window_bounds = array<i64: 1, 128>}, {pipeline_mode = #tpu.pipeline_mode<synchronous>, transform_indices = @transform_6, window_bounds = array<i64: 128, 128>}, {pipeline_mode = #tpu.pipeline_mode<synchronous>, transform_indices = @transform_7, window_bounds = array<i64: 1, 128>}, {pipeline_mode = #tpu.pipeline_mode<synchronous>, transform_indices = @transform_8, window_bounds = array<i64: 128, 128>}, {pipeline_mode = #tpu.pipeline_mode<synchronous>, transform_indices = @transform_9, window_bounds = array<i64: 1, 128>}, {pipeline_mode = #tpu.pipeline_mode<synchronous>, transform_indices = @transform_10, window_bounds = array<i64: 128, 256>}, {pipeline_mode = #tpu.pipeline_mode<synchronous>, transform_indices = @transform_11, window_bounds = array<i64: 1, 256>}, {transform_indices = @transform_12, window_bounds = array<i64: 16, 256>}, {transform_indices = @transform_13, window_bounds = array<i64: 16, 128>}, {transform_indices = @transform_14, window_bounds = array<i64: 16, 128>}]} {
    %c0 = arith.constant 0 : index
    %c0_0 = arith.constant 0 : index
    %0 = vector.load %arg1[%c0, %c0_0] : memref<16x256xf32, #tpu.memory_space<vmem>>, vector<16x256xf32>
    %c0_1 = arith.constant 0 : index
    %c0_2 = arith.constant 0 : index
    %1 = vector.load %arg3[%c0_1, %c0_2] : memref<256x128xf32, #tpu.memory_space<vmem>>, vector<256x128xf32>
    %cst = arith.constant dense<0.000000e+00> : vector<16x128xf32>
    %2 = tpu.matmul %0, %1, %cst {dimension_numbers = #tpu.dot_dimension_numbers<[1], [0], [0], [1], [0, 0, 1, 1], [], []>} : vector<16x256xf32>, vector<256x128xf32>, vector<16x128xf32> -> vector<16x128xf32>
    %c0_3 = arith.constant 0 : index
    %c0_4 = arith.constant 0 : index
    %3 = vector.load %arg4[%c0_3, %c0_4] : memref<1x128xf32, #tpu.memory_space<vmem>>, vector<1x128xf32>
    %4 = vector.broadcast %3 : vector<1x128xf32> to vector<16x128xf32>
    %5 = arith.addf %2, %4 : vector<16x128xf32>
    %cst_5 = arith.constant 0.000000e+00 : f32
    %6 = vector.broadcast %cst_5 : f32 to vector<16x128xf32>
    %7 = arith.maximumf %5, %6 : vector<16x128xf32>
    %c0_6 = arith.constant 0 : index
    %c0_7 = arith.constant 0 : index
    %8 = vector.load %arg5[%c0_6, %c0_7] : memref<128x128xf32, #tpu.memory_space<vmem>>, vector<128x128xf32>
    %cst_8 = arith.constant dense<0.000000e+00> : vector<16x128xf32>
    %9 = tpu.matmul %7, %8, %cst_8 {dimension_numbers = #tpu.dot_dimension_numbers<[1], [0], [0], [1], [0, 0, 1, 1], [], []>} : vector<16x128xf32>, vector<128x128xf32>, vector<16x128xf32> -> vector<16x128xf32>
    %c0_9 = arith.constant 0 : index
    %c0_10 = arith.constant 0 : index
    %10 = vector.load %arg6[%c0_9, %c0_10] : memref<1x128xf32, #tpu.memory_space<vmem>>, vector<1x128xf32>
    %11 = vector.broadcast %10 : vector<1x128xf32> to vector<16x128xf32>
    %12 = arith.addf %9, %11 : vector<16x128xf32>
    %c0_11 = arith.constant 0 : index
    %c0_12 = arith.constant 0 : index
    %13 = vector.load %arg7[%c0_11, %c0_12] : memref<128x128xf32, #tpu.memory_space<vmem>>, vector<128x128xf32>
    %cst_13 = arith.constant dense<0.000000e+00> : vector<16x128xf32>
    %14 = tpu.matmul %7, %13, %cst_13 {dimension_numbers = #tpu.dot_dimension_numbers<[1], [0], [0], [1], [0, 0, 1, 1], [], []>} : vector<16x128xf32>, vector<128x128xf32>, vector<16x128xf32> -> vector<16x128xf32>
    %c0_14 = arith.constant 0 : index
    %c0_15 = arith.constant 0 : index
    %15 = vector.load %arg8[%c0_14, %c0_15] : memref<1x128xf32, #tpu.memory_space<vmem>>, vector<1x128xf32>
    %16 = vector.broadcast %15 : vector<1x128xf32> to vector<16x128xf32>
    %17 = arith.addf %14, %16 : vector<16x128xf32>
    %c0_16 = arith.constant 0 : index
    %c0_17 = arith.constant 0 : index
    %18 = vector.load %arg2[%c0_16, %c0_17] : memref<16x128xf32, #tpu.memory_space<vmem>>, vector<16x128xf32>
    %cst_18 = arith.constant 5.000000e-01 : f32
    %19 = vector.broadcast %cst_18 : f32 to vector<16x128xf32>
    %20 = arith.mulf %19, %17 : vector<16x128xf32>
    %21 = math.exp %20 : vector<16x128xf32>
    %22 = arith.mulf %18, %21 : vector<16x128xf32>
    %23 = arith.addf %12, %22 : vector<16x128xf32>
    %c0_19 = arith.constant 0 : index
    %c0_20 = arith.constant 0 : index
    %24 = vector.load %arg9[%c0_19, %c0_20] : memref<128x128xf32, #tpu.memory_space<vmem>>, vector<128x128xf32>
    %cst_21 = arith.constant dense<0.000000e+00> : vector<16x128xf32>
    %25 = tpu.matmul %23, %24, %cst_21 {dimension_numbers = #tpu.dot_dimension_numbers<[1], [0], [0], [1], [0, 0, 1, 1], [], []>} : vector<16x128xf32>, vector<128x128xf32>, vector<16x128xf32> -> vector<16x128xf32>
    %c0_22 = arith.constant 0 : index
    %c0_23 = arith.constant 0 : index
    %26 = vector.load %arg10[%c0_22, %c0_23] : memref<1x128xf32, #tpu.memory_space<vmem>>, vector<1x128xf32>
    %27 = vector.broadcast %26 : vector<1x128xf32> to vector<16x128xf32>
    %28 = arith.addf %25, %27 : vector<16x128xf32>
    %cst_24 = arith.constant 0.000000e+00 : f32
    %29 = vector.broadcast %cst_24 : f32 to vector<16x128xf32>
    %30 = arith.maximumf %28, %29 : vector<16x128xf32>
    %c0_25 = arith.constant 0 : index
    %c0_26 = arith.constant 0 : index
    %31 = vector.load %arg11[%c0_25, %c0_26] : memref<128x256xf32, #tpu.memory_space<vmem>>, vector<128x256xf32>
    %cst_27 = arith.constant dense<0.000000e+00> : vector<16x256xf32>
    %32 = tpu.matmul %30, %31, %cst_27 {dimension_numbers = #tpu.dot_dimension_numbers<[1], [0], [0], [1], [0, 0, 1, 1], [], []>} : vector<16x128xf32>, vector<128x256xf32>, vector<16x256xf32> -> vector<16x256xf32>
    %c0_28 = arith.constant 0 : index
    %c0_29 = arith.constant 0 : index
    %33 = vector.load %arg12[%c0_28, %c0_29] : memref<1x256xf32, #tpu.memory_space<vmem>>, vector<1x256xf32>
    %34 = vector.broadcast %33 : vector<1x256xf32> to vector<16x256xf32>
    %35 = arith.addf %32, %34 : vector<16x256xf32>
    %36 = arith.negf %35 : vector<16x256xf32>
    %37 = math.exp %36 : vector<16x256xf32>
    %cst_30 = arith.constant 1.000000e+00 : f32
    %38 = vector.broadcast %cst_30 : f32 to vector<16x256xf32>
    %39 = arith.addf %38, %37 : vector<16x256xf32>
    %40 = arith.divf %38, %39 : vector<16x256xf32>
    %c0_31 = arith.constant 0 : index
    %c0_32 = arith.constant 0 : index
    %41 = vector.load %arg13[%c0_31, %c0_32] : memref<16x256xf32, #tpu.memory_space<vmem>>, vector<16x256xf32>
    tpu.vector_store %arg13[%c0_31, %c0_32], %40 {strides = array<i32>} : memref<16x256xf32, #tpu.memory_space<vmem>>, vector<16x256xf32>,
    %c0_33 = arith.constant 0 : index
    %c0_34 = arith.constant 0 : index
    %42 = vector.load %arg14[%c0_33, %c0_34] : memref<16x128xf32, #tpu.memory_space<vmem>>, vector<16x128xf32>
    tpu.vector_store %arg14[%c0_33, %c0_34], %12 {strides = array<i32>} : memref<16x128xf32, #tpu.memory_space<vmem>>, vector<16x128xf32>,
    %c0_35 = arith.constant 0 : index
    %c0_36 = arith.constant 0 : index
    %43 = vector.load %arg15[%c0_35, %c0_36] : memref<16x128xf32, #tpu.memory_space<vmem>>, vector<16x128xf32>
    tpu.vector_store %arg15[%c0_35, %c0_36], %17 {strides = array<i32>} : memref<16x128xf32, #tpu.memory_space<vmem>>, vector<16x128xf32>,
    return
  }
  func.func @transform_0(%arg0: i32) -> (i32, i32) {
    %c0_i32 = arith.constant 0 : i32
    %c0_i32_0 = arith.constant 0 : i32
    return %arg0, %c0_i32 : i32, i32
  }
  func.func @transform_1(%arg0: i32) -> (i32, i32) {
    %c0_i32 = arith.constant 0 : i32
    %c0_i32_0 = arith.constant 0 : i32
    return %arg0, %c0_i32 : i32, i32
  }
  func.func @transform_2(%arg0: i32) -> (i32, i32) {
    %c0_i32 = arith.constant 0 : i32
    %c0_i32_0 = arith.constant 0 : i32
    %c0_i32_1 = arith.constant 0 : i32
    return %c0_i32, %c0_i32_0 : i32, i32
  }
  func.func @transform_3(%arg0: i32) -> (i32, i32) {
    %c0_i32 = arith.constant 0 : i32
    %c0_i32_0 = arith.constant 0 : i32
    %c0_i32_1 = arith.constant 0 : i32
    return %c0_i32, %c0_i32_0 : i32, i32
  }
  func.func @transform_4(%arg0: i32) -> (i32, i32) {
    %c0_i32 = arith.constant 0 : i32
    %c0_i32_0 = arith.constant 0 : i32
    %c0_i32_1 = arith.constant 0 : i32
    return %c0_i32, %c0_i32_0 : i32, i32
  }
  func.func @transform_5(%arg0: i32) -> (i32, i32) {
    %c0_i32 = arith.constant 0 : i32
    %c0_i32_0 = arith.constant 0 : i32
    %c0_i32_1 = arith.constant 0 : i32
    return %c0_i32, %c0_i32_0 : i32, i32
  }
  func.func @transform_6(%arg0: i32) -> (i32, i32) {
    %c0_i32 = arith.constant 0 : i32
    %c0_i32_0 = arith.constant 0 : i32
    %c0_i32_1 = arith.constant 0 : i32
    return %c0_i32, %c0_i32_0 : i32, i32
  }
  func.func @transform_7(%arg0: i32) -> (i32, i32) {
    %c0_i32 = arith.constant 0 : i32
    %c0_i32_0 = arith.constant 0 : i32
    %c0_i32_1 = arith.constant 0 : i32
    return %c0_i32, %c0_i32_0 : i32, i32
  }
  func.func @transform_8(%arg0: i32) -> (i32, i32) {
    %c0_i32 = arith.constant 0 : i32
    %c0_i32_0 = arith.constant 0 : i32
    %c0_i32_1 = arith.constant 0 : i32
    return %c0_i32, %c0_i32_0 : i32, i32
  }
  func.func @transform_9(%arg0: i32) -> (i32, i32) {
    %c0_i32 = arith.constant 0 : i32
    %c0_i32_0 = arith.constant 0 : i32
    %c0_i32_1 = arith.constant 0 : i32
    return %c0_i32, %c0_i32_0 : i32, i32
  }
  func.func @transform_10(%arg0: i32) -> (i32, i32) {
    %c0_i32 = arith.constant 0 : i32
    %c0_i32_0 = arith.constant 0 : i32
    %c0_i32_1 = arith.constant 0 : i32
    return %c0_i32, %c0_i32_0 : i32, i32
  }
  func.func @transform_11(%arg0: i32) -> (i32, i32) {
    %c0_i32 = arith.constant 0 : i32
    %c0_i32_0 = arith.constant 0 : i32
    %c0_i32_1 = arith.constant 0 : i32
    return %c0_i32, %c0_i32_0 : i32, i32
  }
  func.func @transform_12(%arg0: i32) -> (i32, i32) {
    %c0_i32 = arith.constant 0 : i32
    %c0_i32_0 = arith.constant 0 : i32
    return %arg0, %c0_i32 : i32, i32
  }
  func.func @transform_13(%arg0: i32) -> (i32, i32) {
    %c0_i32 = arith.constant 0 : i32
    %c0_i32_0 = arith.constant 0 : i32
    return %arg0, %c0_i32 : i32, i32
  }
  func.func @transform_14(%arg0: i32) -> (i32, i32) {
    %c0_i32 = arith.constant 0 : i32
    %c0_i32_0 = arith.constant 0 : i32
    return %arg0, %c0_i32 : i32, i32
  }
}

</mosaic_0001>

<bundles_post_ra>
// kernel: vae_forward.1
= control target key start
LH: loop header
LB: loop body
LE: loop exit
PB: predicated region body
PF: predicated region fallthrough
CT: control target
= control target key end

     0   :  { %20 = vsyncpa [#allocation3], 0  ;;  %s2048_s0 = inlined_call_operand.vmem [shape: f32[32,256], index: 0, kind: input, shape index: {}]   ;;  %s2049_s1 = inlined_call_operand.vmem [shape: f32[32,128], index: 1, kind: input, shape index: {}]   ;;  %s2050_s2 = inlined_call_operand.hbm [shape: f32[256,128], index: 2, kind: input, shape index: {}]   ;;  %s2051_s3 = inlined_call_operand.vmem [shape: f32[1,128], index: 3, kind: input, shape index: {}]   ;;  %s2052_s4 = inlined_call_operand.vmem [shape: f32[128,128], index: 4, kind: input, shape index: {}]   ;;  %s2053_s5 = inlined_call_operand.vmem [shape: f32[1,128], index: 5, kind: input, shape index: {}]   ;;  %s2054_s6 = inlined_call_operand.hbm [shape: f32[128,128], index: 6, kind: input, shape index: {}]   ;;  %s2055_s7 = inlined_call_operand.vmem [shape: f32[1,128], index: 7, kind: input, shape index: {}]   ;;  %s2056_s8 = inlined_call_operand.hbm [shape: f32[128,128], index: 8, kind: input, shape index: {}]   ;;  %s2057_s9 = inlined_call_operand.vmem [shape: f32[1,128], index: 9, kind: input, shape index: {}]   ;;  %s2058_s10 = inlined_call_operand.hbm [shape: f32[128,256], index: 10, kind: input, shape index: {}]   ;;  %s2059_s11 = inlined_call_operand.vmem [shape: f32[1,256], index: 11, kind: input, shape index: {}]   ;;  %s2060_s12 = inlined_call_operand.vmem [shape: f32[32,256], index: 12, kind: output, shape index: {0}]   ;;  %s2061_s13 = inlined_call_operand.vmem [shape: f32[32,128], index: 13, kind: output, shape index: {1}]   ;;  %s2062_s14 = inlined_call_operand.vmem [shape: f32[32,128], index: 14, kind: output, shape index: {2}]  }
   0x1   :  { %21 = vsyncpa [#allocation5], 0 }
   0x2   :  { %22 = vsyncpa [#allocation8], 0  ;;  %s1860_s29 = smov 0  }
   0x3 LB: > { %s1344_s30 = sadd.s32 4294967295, %s1774_s29   ;;  %p1346_p0 = scmp.ge.s32.totalorder %s1774_s29, 1  ;;  %s1774_s29 = sphi %s1860_s29, %s28_s29  }
   0x4   : > { %p373_p1 = scmp.lt.s32.totalorder %s1774_s29, 3  ;;  %p1870_p2 = scmp.eq.s32.totalorder %s1344_s30, 0 }
   0x5   : > { %s1776_s17 = smov [#allocation4]   ;;  %s1777_s19 = smov [#allocation2]  }
   0x6   : > { %p1874_p3 = pnand %p1346_p0, %p373_p1  ;;  %s407_s18 = sshll.u32 %s1776_s17, 4  ;;  %s408_s18 = int_to_ptr.vmem [resolvable:$true] %s407_s18 }
   0x7   : > { %s385_s20 = sshll.u32 %s1777_s19, 4  ;;  %s1778_s22 = smov [#allocation6]   ;;  %s1880_s20 = int_to_ptr.vmem [resolvable:$true] %s385_s20 }
   0x8   : > { %p1594_p4 = pneg %p1874_p3  ;;  %s423_s23 = sshll.u32 %s1778_s22, 4  ;;  %s1888_s23 = int_to_ptr.vmem [resolvable:$true] %s423_s23 }
   0x9   : > { %s1779_s24 = smov [#allocation7]   ;;  %s1663_s26 = scalar_lea.vmem %s408_s18, 2048 }
   0xa   : > { %p1884_p5 = pnand %p1870_p2, %p1594_p4  ;;  %s1890_s25 = sshll.u32 %s1779_s24, 4  ;;  %s440_s25 = int_to_ptr.vmem [resolvable:$true] %s1890_s25 }
   0xb   : > { %p1664_p7 = scmp.ne.s32.totalorder %s408_s18, %s1663_s26  ;;  %p1671_p10 = scmp.lt.s32.totalorder %s408_s18, %s408_s18 }
   0xc   : > { %p1654_p6 = pneg %p1884_p5  ;;  %p1672_p11 = scmp.lt.s32.totalorder %s1663_s26, %s1663_s26 }
   0xe   : > { %p1666_p8 = pnand %p1664_p7, %p1654_p6  ;;  %p1673_p12 = por %p1672_p11, %p1671_p10 }
  0x10   : > { %p1667_p9 = pneg %p1666_p8 }
  0x12   : > { %p1674_p13 = pnand %p1673_p12, %p1667_p9 }
  0x14   : > { %1677 = shalt.err (!%p1674_p13)
}
  0x15   : > { %s1780_s27 = smov 128   ;;  %s1781_s28 = smov 8  }
  0x16   : > { %1600 = dma.hbm_to_vmem [thread:$0]  (!%p1884_p5), %s2054_s6, 2048, %s408_s18, [#allocation5], %s1780_s27, %s1780_s27, %s1781_s28  }
  0x17   : > { %s1689_s22 = scalar_lea.vmem %s1880_s20, 4096  ;;  %p1697_p7 = scmp.lt.s32.totalorder %s1880_s20, %s1880_s20 }
  0x18   : > { %p1690_p0 = scmp.ne.s32.totalorder %s1880_s20, %s1689_s22  ;;  %p1698_p8 = scmp.lt.s32.totalorder %s1689_s22, %s1689_s22 }
  0x1a   : > { %p1692_p1 = pnand %p1690_p0, %p1654_p6  ;;  %p1699_p9 = por %p1698_p8, %p1697_p7 }
  0x1c   : > { %p1693_p4 = pneg %p1692_p1 }
  0x1e   : > { %p1700_p10 = pnand %p1699_p9, %p1693_p4 }
  0x20   : > { %1703 = shalt.err (!%p1700_p10)
}
  0x21   : > { %1597 = dma.hbm_to_vmem [thread:$0]  (!%p1884_p5), %s2050_s2, 4096, %s1880_s20, [#allocation3], %s1780_s27, %s1780_s27, %s1781_s28  }
  0x22   : > { %s1715_s18 = scalar_lea.vmem %s1888_s23, 2048  ;;  %p1723_p0 = scmp.lt.s32.totalorder %s1888_s23, %s1888_s23 }
  0x23   : > { %p1716_p11 = scmp.ne.s32.totalorder %s1888_s23, %s1715_s18  ;;  %p1724_p1 = scmp.lt.s32.totalorder %s1715_s18, %s1715_s18 }
  0x25   : > { %p1718_p12 = pnand %p1716_p11, %p1654_p6  ;;  %p1725_p4 = por %p1724_p1, %p1723_p0 }
  0x27   : > { %p1719_p13 = pneg %p1718_p12 }
  0x29   : > { %p1726_p7 = pnand %p1725_p4, %p1719_p13 }
  0x2b   : > { %1729 = shalt.err (!%p1726_p7)
}
  0x2c   : > { %1603 = dma.hbm_to_vmem [thread:$0]  (!%p1884_p5), %s2056_s8, 2048, %s1888_s23, [#allocation5], %s1780_s27, %s1780_s27, %s1781_s28  }
  0x2d   : > { %s1741_s20 = scalar_lea.vmem %s440_s25, 4096  ;;  %p1749_p11 = scmp.lt.s32.totalorder %s440_s25, %s440_s25 }
  0x2e   : > { %p1742_p8 = scmp.ne.s32.totalorder %s440_s25, %s1741_s20  ;;  %p1750_p12 = scmp.lt.s32.totalorder %s1741_s20, %s1741_s20 }
  0x30   : > { %p1744_p9 = pnand %p1742_p8, %p1654_p6  ;;  %p1751_p13 = por %p1750_p12, %p1749_p11 }
  0x32   : > { %p1745_p10 = pneg %p1744_p9 }
  0x34   : > { %p1752_p0 = pnand %p1751_p13, %p1745_p10 }
  0x36   : > { %1755 = shalt.err (!%p1752_p0)
}
  0x37   : > { %s1782_s22 = smov 256   ;;  %s1783_s24 = smov 16  }
  0x38   : > { %1606 = dma.hbm_to_vmem [thread:$0]  (!%p1884_p5), %s2058_s10, 4096, %s440_s25, [#allocation8], %s1782_s22, %s1782_s22, %s1783_s24  }
  0x39   : > { %477 = sbr.rel (%p1874_p3) target bundleno = 958 (0x3be), region = 68 }
  0x3e   : > { %1761 = dma.done.wait (%p1870_p2), [#allocation3], 4096  }
  0x3f   : > { %1763 = vsyncadd (%p1870_p2), [#allocation3], 4294963200 }
  0x40   : > { %1765 = dma.done.wait (%p1870_p2), [#allocation5], 4096  }
  0x41   : > { %1767 = vsyncadd (%p1870_p2), [#allocation5], 4294963200 }
  0x42   : > { %1769 = dma.done.wait (%p1870_p2), [#allocation8], 4096  }
  0x43   : > { %1771 = vsyncadd (%p1870_p2), [#allocation8], 4294963200  ;;  %s1357_s16 = sshll.u32 %s1344_s30, 1  ;;  %v619_v0 = vld [vmem:[#allocation2 + $0xf8] sm:$0xff]  ;;  %v618_v2 = vld [vmem:[#allocation2 + $0xf0] sm:$0xff] }
  0x44   : > { %p553_p3 = scmp.lt.s32.totalorder %s1357_s16, 3  ;;  %v603_v1 = vld [vmem:[#allocation2 + $0x78] sm:$0xff]  ;;  %1381 = vmatprep.subr.mxu1 %v619_v0  ;;  %v602_v3 = vld [vmem:[#allocation2 + $0x70] sm:$0xff]  ;;  %v617_v4 = vld [vmem:[#allocation2 + $0xe8] sm:$0xff] }
  0x45   : > { %1382 = vmatpush3.msra.mxu1 %v603_v1  ;;  %v601_v5 = vld [vmem:[#allocation2 + $0x68] sm:$0xff]  ;;  %v616_v6 = vld [vmem:[#allocation2 + $0xe0] sm:$0xff]  ;;  %v615_v8 = vld [vmem:[#allocation2 + $0xd8] sm:$0xff] }
  0x46   : > { %s2067_s16 = smov (!%p553_p3, %s1357_s16), 3  ;;  %1383 = vmatprep.subr.mxu1 %v618_v2  ;;  %v600_v7 = vld [vmem:[#allocation2 + $0x60] sm:$0xff]  ;;  %v599_v9 = vld [vmem:[#allocation2 + $0x58] sm:$0xff]  ;;  %v614_v10 = vld [vmem:[#allocation2 + $0xd0] sm:$0xff] }
  0x47   : > { %1384 = vmatpush3.msra.mxu1 %v602_v3  ;;  %s1379_s15 = sshll.u32 %s2067_s16, 4  ;;  %v598_v11 = vld [vmem:[#allocation2 + $0x50] sm:$0xff]  ;;  %v613_v12 = vld [vmem:[#allocation2 + $0xc8] sm:$0xff]  ;;  %v612_v15 = vld [vmem:[#allocation2 + $0xc0] sm:$0xff]  ;;  %s1361_s30 = sshll.u32 %s2067_s16, 3 }
  0x48   : > { %1385 = vmatprep.subr.mxu1 %v617_v4  ;;  %s1961_s23 = scalar_lea.vmem %s2048_s0, %s1379_s15  ;;  %v597_v14 = vld [vmem:[#allocation2 + $0x48] sm:$0xff]  ;;  %v817_v16 = vld [vmem:[#allocation4 + $0x78] sm:$0xff]  ;;  %v596_v17 = vld [vmem:[#allocation2 + $0x40] sm:$0xff]  ;;  %s576_s28 = scalar_lea.vmem %s2061_s13, %s1361_s30 }
  0x49   : > { %1386 = vmatpush3.msra.mxu1 %v601_v5  ;;  %v585_v13 = vld [vmem:[%s1961_s23 + $0x8] sm:$0xff]  ;;  %1508 = vmatprep.subr.mxu0 %v817_v16  ;;  %v816_v18 = vld [vmem:[#allocation4 + $0x70] sm:$0xff]  ;;  %v611_v19 = vld [vmem:[#allocation2 + $0xb8] sm:$0xff]  ;;  %s582_s20 = scalar_lea.vmem %s2062_s14, %s1361_s30  ;;  %s563_s26 = scalar_lea.vmem %s2049_s1, %s1361_s30 }
  0x4a   : > { %1387 = vmatprep.subr.mxu1 %v616_v6  ;;  %691 = vmatprep.mubr.f32.mxu1 %v585_v13  ;;  %v815_v20 = vld [vmem:[#allocation4 + $0x68] sm:$0xff]  ;;  %v595_v21 = vld [vmem:[#allocation2 + $0x38] sm:$0xff]  ;;  %v610_v22 = vld [vmem:[#allocation2 + $0xb0] sm:$0xff] }
  0x4b   : > { %1388 = vmatpush3.msra.mxu1 %v600_v7  ;;  %1509 = vmatpush3.msra.mxu0 %v817_v16  ;;  %v814_v23 = vld [vmem:[#allocation4 + $0x60] sm:$0xff]  ;;  %v594_v24 = vld [vmem:[#allocation2 + $0x30] sm:$0xff]  ;;  %v609_v25 = vld [vmem:[#allocation2 + $0xa8] sm:$0xff] }
  0x4c   : > { %1389 = vmatprep.subr.mxu1 %v615_v8  ;;  %1510 = vmatprep.subr.mxu0 %v816_v18  ;;  %v813_v26 = vld [vmem:[#allocation4 + $0x58] sm:$0xff]  ;;  %v593_v27 = vld [vmem:[#allocation2 + $0x28] sm:$0xff]  ;;  %v608_v28 = vld [vmem:[#allocation2 + $0xa0] sm:$0xff] }
  0x4d   : > { %1390 = vmatpush3.msra.mxu1 %v599_v9  ;;  %1511 = vmatpush3.msra.mxu0 %v816_v18  ;;  %v812_v29 = vld [vmem:[#allocation4 + $0x50] sm:$0xff]  ;;  %v592_v30 = vld [vmem:[#allocation2 + $0x20] sm:$0xff]  ;;  %v607_v31 = vld [vmem:[#allocation2 + $0x98] sm:$0xff] }
  0x4e   : > { %1391 = vmatprep.subr.mxu1 %v614_v10  ;;  %1512 = vmatprep.subr.mxu0 %v815_v20  ;;  %v811_v32 = vld [vmem:[#allocation4 + $0x48] sm:$0xff]  ;;  %v591_v33 = vld [vmem:[#allocation2 + $0x18] sm:$0xff]  ;;  %v606_v34 = vld [vmem:[#allocation2 + $0x90] sm:$0xff] }
  0x4f   : > { %1392 = vmatpush3.msra.mxu1 %v598_v11  ;;  %1513 = vmatpush3.msra.mxu0 %v815_v20  ;;  %v810_v35 = vld [vmem:[#allocation4 + $0x40] sm:$0xff]  ;;  %v590_v36 = vld [vmem:[#allocation2 + $0x10] sm:$0xff]  ;;  %v605_v37 = vld [vmem:[#allocation2 + $0x88] sm:$0xff] }
  0x50   : > { %1393 = vmatprep.subr.mxu1 %v613_v12  ;;  %1514 = vmatprep.subr.mxu0 %v814_v23  ;;  %v809_v38 = vld [vmem:[#allocation4 + $0x38] sm:$0xff]  ;;  %v589_v39 = vld [vmem:[#allocation2 + $0x8] sm:$0xff]  ;;  %v604_v40 = vld [vmem:[#allocation2 + $0x80] sm:$0xff] }
  0x51   : > { %1394 = vmatpush3.msra.mxu1 %v597_v14  ;;  %1515 = vmatpush3.msra.mxu0 %v814_v23  ;;  %v808_v41 = vld [vmem:[#allocation4 + $0x30] sm:$0xff]  ;;  %v588_v42 = vld [vmem:[#allocation2] sm:$0xff]  ;;  %v719_v44 = vld [vmem:[%s2052_s4 + $0x78] sm:$0xff] }
  0x52   : > { %1395 = vmatprep.subr.mxu1 %v612_v15  ;;  %1516 = vmatprep.subr.mxu0 %v813_v26  ;;  %v584_v43 = vld [vmem:[%s1961_s23] sm:$0xff]  ;;  %v587_v45 = vld [vmem:[%s1961_s23 + $0x18] sm:$0xff]  ;;  %v718_v46 = vld [vmem:[%s2052_s4 + $0x70] sm:$0xff] }
  0x53   : > { %1396 = vmatpush3.msra.mxu1 %v596_v17  ;;  %1517 = vmatpush3.msra.mxu0 %v813_v26  ;;  %v586_v47 = vld [vmem:[%s1961_s23 + $0x10] sm:$0xff]  ;;  %v717_v48 = vld [vmem:[%s2052_s4 + $0x68] sm:$0xff]  ;;  %v716_v49 = vld [vmem:[%s2052_s4 + $0x60] sm:$0xff] }
  0x54   : > { %1397 = vmatprep.subr.mxu1 %v611_v19  ;;  %1518 = vmatprep.subr.mxu0 %v812_v29  ;;  %v715_v50 = vld [vmem:[%s2052_s4 + $0x58] sm:$0xff]  ;;  %v714_v51 = vld [vmem:[%s2052_s4 + $0x50] sm:$0xff]  ;;  %v713_v52 = vld [vmem:[%s2052_s4 + $0x48] sm:$0xff] }
  0x55   : > { %1398 = vmatpush3.msra.mxu1 %v595_v21  ;;  %1519 = vmatpush3.msra.mxu0 %v812_v29  ;;  %v712_v53 = vld [vmem:[%s2052_s4 + $0x40] sm:$0xff]  ;;  %v711_v54 = vld [vmem:[%s2052_s4 + $0x38] sm:$0xff]  ;;  %v710_v55 = vld [vmem:[%s2052_s4 + $0x30] sm:$0xff] }
  0x56   : > { %1399 = vmatprep.subr.mxu1 %v610_v22  ;;  %1520 = vmatprep.subr.mxu0 %v811_v32  ;;  %v709_v56 = vld [vmem:[%s2052_s4 + $0x28] sm:$0xff]  ;;  %v708_v58 = vld [vmem:[%s2052_s4 + $0x20] sm:$0xff]  ;;  %v707_v60 = vld [vmem:[%s2052_s4 + $0x18] sm:$0xff] }
  0x57   : > { %1400 = vmatpush3.msra.mxu1 %v594_v24  ;;  %1521 = vmatpush3.msra.mxu0 %v811_v32  ;;  %v807_v57 = vld [vmem:[#allocation4 + $0x28] sm:$0xff]  ;;  %v806_v59 = vld [vmem:[#allocation4 + $0x20] sm:$0xff]  ;;  %v805_v61 = vld [vmem:[#allocation4 + $0x18] sm:$0xff] }
  0x58   : > { %1401 = vmatprep.subr.mxu1 %v609_v25  ;;  %1522 = vmatprep.subr.mxu0 %v810_v35  ;;  %v706_v62 = vld [vmem:[%s2052_s4 + $0x10] sm:$0xff]  ;;  %v705_v0 = vld [vmem:[%s2052_s4 + $0x8] sm:$0xff]  ;;  %v704_v2 = vld [vmem:[%s2052_s4] sm:$0xff] }
  0x59   : > { %1402 = vmatpush3.msra.mxu1 %v593_v27  ;;  %1523 = vmatpush3.msra.mxu0 %v810_v35  ;;  %v804_v63 = vld [vmem:[#allocation4 + $0x10] sm:$0xff]  ;;  %v803_v1 = vld [vmem:[#allocation4 + $0x8] sm:$0xff]  ;;  %v802_v3 = vld [vmem:[#allocation4] sm:$0xff] }
  0x5a   : > { %1403 = vmatprep.subr.mxu1 %v608_v28  ;;  %1524 = vmatprep.subr.mxu0 %v809_v38  ;;  %v927_v4 = vld [vmem:[#allocation6 + $0x78] sm:$0xff]  ;;  %v1369_v6 = vld [vmem:[%s2051_s3] ss:$0 sm:$0xff]  ;;  %v926_v16 = vld [vmem:[#allocation6 + $0x70] sm:$0xff] }
  0x5b   : > { %1404 = vmatpush3.msra.mxu1 %v592_v30  ;;  %1525 = vmatpush3.msra.mxu0 %v809_v38  ;;  %v925_v17 = vld [vmem:[#allocation6 + $0x68] sm:$0xff]  ;;  %v924_v18 = vld [vmem:[#allocation6 + $0x60] sm:$0xff]  ;;  %v923_v19 = vld [vmem:[#allocation6 + $0x58] sm:$0xff] }
  0x5c   : > { %1405 = vmatprep.subr.mxu1 %v607_v31  ;;  %1526 = vmatprep.subr.mxu0 %v808_v41  ;;  %v922_v20 = vld [vmem:[#allocation6 + $0x50] sm:$0xff]  ;;  %v921_v21 = vld [vmem:[#allocation6 + $0x48] sm:$0xff]  ;;  %v920_v22 = vld [vmem:[#allocation6 + $0x40] sm:$0xff] }
  0x5d   : > { %1406 = vmatpush3.msra.mxu1 %v591_v33  ;;  %1527 = vmatpush3.msra.mxu0 %v808_v41  ;;  %v919_v23 = vld [vmem:[#allocation6 + $0x38] sm:$0xff]  ;;  %v918_v24 = vld [vmem:[#allocation6 + $0x30] sm:$0xff]  ;;  %v917_v25 = vld [vmem:[#allocation6 + $0x28] sm:$0xff] }
  0x5e   : > { %1407 = vmatprep.subr.mxu1 %v606_v34  ;;  %1528 = vmatprep.subr.mxu0 %v807_v57  ;;  %v916_v26 = vld [vmem:[#allocation6 + $0x20] sm:$0xff]  ;;  %v915_v27 = vld [vmem:[#allocation6 + $0x18] sm:$0xff]  ;;  %v914_v28 = vld [vmem:[#allocation6 + $0x10] sm:$0xff] }
  0x5f   : > { %1408 = vmatpush3.msra.mxu1 %v590_v36  ;;  %1529 = vmatpush3.msra.mxu0 %v807_v57  ;;  %v913_v29 = vld [vmem:[#allocation6 + $0x8] sm:$0xff]  ;;  %v912_v30 = vld [vmem:[#allocation6] sm:$0xff]  ;;  %v1043_v31 = vld [vmem:[#allocation7 + $0xf8] sm:$0xff] }
  0x60   : > { %1409 = vmatprep.subr.mxu1 %v605_v37  ;;  %1530 = vmatprep.subr.mxu0 %v806_v59  ;;  %v1042_v32 = vld [vmem:[#allocation7 + $0xf0] sm:$0xff]  ;;  %v1041_v33 = vld [vmem:[#allocation7 + $0xe8] sm:$0xff]  ;;  %v1040_v34 = vld [vmem:[#allocation7 + $0xe0] sm:$0xff] }
  0x61   : > { %1410 = vmatpush3.msra.mxu1 %v589_v39  ;;  %1531 = vmatpush3.msra.mxu0 %v806_v59  ;;  %v1039_v35 = vld [vmem:[#allocation7 + $0xd8] sm:$0xff]  ;;  %v1038_v36 = vld [vmem:[#allocation7 + $0xd0] sm:$0xff]  ;;  %v1037_v37 = vld [vmem:[#allocation7 + $0xc8] sm:$0xff] }
  0x62   : > { %1411 = vmatprep.subr.mxu1 %v604_v40  ;;  %1532 = vmatprep.subr.mxu0 %v805_v61  ;;  %v1036_v38 = vld [vmem:[#allocation7 + $0xc0] sm:$0xff]  ;;  %v1035_v39 = vld [vmem:[#allocation7 + $0xb8] sm:$0xff]  ;;  %v1034_v40 = vld [vmem:[#allocation7 + $0xb0] sm:$0xff] }
  0x63   : > { %1412 = vmatpush3.msra.mxu1 %v588_v42  ;;  %1533 = vmatpush3.msra.mxu0 %v805_v61  ;;  %v1033_v41 = vld [vmem:[#allocation7 + $0xa8] sm:$0xff]  ;;  %v1032_v42 = vld [vmem:[#allocation7 + $0xa0] sm:$0xff] }
  0x64   : > { %692 = vmatmul.mubr.f32.vlgmr.msra.gmra.mxu1 %v584_v43  ;;  %1473 = vmatprep.subr.mxu1 %v719_v44  ;;  %v1031_v43 = vld [vmem:[#allocation7 + $0x98] sm:$0xff]  ;;  %v1370_v59 = vld [vmem:[%s2053_s5] ss:$0 sm:$0xff] }
  0x65   : > { %696 = vmatprep.mubr.f32.mxu1 %v587_v45  ;;  %1474 = vmatpush3.msra.mxu1 %v719_v44  ;;  %v1030_v44 = vld [vmem:[#allocation7 + $0x90] sm:$0xff]  ;;  %v1029_v45 = vld [vmem:[#allocation7 + $0x88] sm:$0xff] }
  0x66   : > { %1475 = vmatprep.subr.mxu1 %v718_v46  ;;  %1534 = vmatprep.subr.mxu0 %v804_v63 }
  0x67   : > { %1476 = vmatpush3.msra.mxu1 %v718_v46  ;;  %1535 = vmatpush3.msra.mxu0 %v804_v63  ;;  %v1028_v46 = vld [vmem:[#allocation7 + $0x80] sm:$0xff] }
  0x68   : > { %697 = vmatmul.mubr.f32.gmra.mxu1 %v586_v47  ;;  %1477 = vmatprep.subr.mxu1 %v717_v48  ;;  %v1027_v47 = vld [vmem:[#allocation7 + $0x78] sm:$0xff] }
  0x69   : > { %1478 = vmatpush3.msra.mxu1 %v717_v48  ;;  %1536 = vmatprep.subr.mxu0 %v803_v1  ;;  %v1026_v48 = vld [vmem:[#allocation7 + $0x70] sm:$0xff] }
  0x6a   : > { %1479 = vmatprep.subr.mxu1 %v716_v49  ;;  %1537 = vmatpush3.msra.mxu0 %v803_v1 }
  0x6b   : > { %1480 = vmatpush3.msra.mxu1 %v716_v49  ;;  %1538 = vmatprep.subr.mxu0 %v802_v3  ;;  %v1025_v49 = vld [vmem:[#allocation7 + $0x68] sm:$0xff] }
  0x6c   : > { %1481 = vmatprep.subr.mxu1 %v715_v50  ;;  %1539 = vmatpush3.msra.mxu0 %v802_v3 }
  0x6d   : > { %1482 = vmatpush3.msra.mxu1 %v715_v50  ;;  %1056 = vmatprep.subr.mxu0 %v1043_v31  ;;  %v1024_v50 = vld [vmem:[#allocation7 + $0x60] sm:$0xff] }
  0x6e   : > { %1483 = vmatprep.subr.mxu1 %v714_v51 }
  0x6f   : > { %1484 = vmatpush3.msra.mxu1 %v714_v51  ;;  %v1023_v51 = vld [vmem:[#allocation7 + $0x58] sm:$0xff] }
  0x70   : > { %1485 = vmatprep.subr.mxu1 %v713_v52 }
  0x71   : > { %1486 = vmatpush3.msra.mxu1 %v713_v52  ;;  %v1022_v52 = vld [vmem:[#allocation7 + $0x50] sm:$0xff] }
  0x72   : > { %1487 = vmatprep.subr.mxu1 %v712_v53 }
  0x73   : > { %1488 = vmatpush3.msra.mxu1 %v712_v53  ;;  %v1021_v53 = vld [vmem:[#allocation7 + $0x48] sm:$0xff] }
  0x74   : > { %1489 = vmatprep.subr.mxu1 %v711_v54 }
  0x75   : > { %1490 = vmatpush3.msra.mxu1 %v711_v54  ;;  %v1020_v54 = vld [vmem:[#allocation7 + $0x40] sm:$0xff] }
  0x76   : > { %1491 = vmatprep.subr.mxu1 %v710_v55 }
  0x77   : > { %1492 = vmatpush3.msra.mxu1 %v710_v55  ;;  %v1019_v55 = vld [vmem:[#allocation7 + $0x38] sm:$0xff] }
  0x78   : > { %1493 = vmatprep.subr.mxu1 %v709_v56 }
  0x79   : > { %1494 = vmatpush3.msra.mxu1 %v709_v56  ;;  %v1371_v56 = vld [vmem:[%s2055_s7] ss:$0 sm:$0xff] }
  0x7a   : > { %1495 = vmatprep.subr.mxu1 %v708_v58 }
  0x7b   : > { %1496 = vmatpush3.msra.mxu1 %v708_v58 }
  0x7c   : > { %1497 = vmatprep.subr.mxu1 %v707_v60 }
  0x7d   : > { %1498 = vmatpush3.msra.mxu1 %v707_v60 }
  0x7e   : > { %1499 = vmatprep.subr.mxu1 %v706_v62 }
  0x7f   : > { %1500 = vmatpush3.msra.mxu1 %v706_v62 }
  0x80   : > { %1501 = vmatprep.subr.mxu1 %v705_v0 }
  0x81   : > { %1502 = vmatpush3.msra.mxu1 %v705_v0 }
  0x82   : > { %1503 = vmatprep.subr.mxu1 %v704_v2 }
  0x83   : > { %1504 = vmatpush3.msra.mxu1 %v704_v2 }
  0x84   : > { %1543 = vmatprep.subr.mxu1 %v927_v4 }
 0x124   : > { %v1413_v5 = vpop.f32.mrf.mxu1 }
 0x126   : > { %v1414_v7 = vpop.f32.mrf.mxu1 }
 0x127   : > { %v1415_v8 = vadd.f32 %v1414_v7, %v1413_v5 }
 0x128   : > { %v1416_v9 = vpop.f32.mrf.mxu1 }
 0x129   : > { %v694_v10 = vadd.f32 %v1415_v8, %v1369_v6  ;;  %v900_v8 = vld [vmem:[%s563_s26] sm:$0xff] }
 0x12a   : > { %v1417_v11 = vpop.f32.mrf.mxu1 }
 0x12b   : > { %v702_v12 = vmax.f32 %v694_v10, 0.0  ;;  %v1418_v13 = vadd.f32 %v1417_v11, %v1416_v9 }
 0x12d   : > { %v699_v14 = vadd.f32 %v1418_v13, %v1369_v6  ;;  %1505 = vmatprep.mubr.f32.mxu1 %v702_v12  ;;  %1540 = vmatprep.mubr.f32.mxu0 %v702_v12  ;;  %v901_v6 = vld [vmem:[%s563_s26 + $0x8] sm:$0xff] }
 0x12f   : > { %v703_v15 = vmax.f32 %v699_v14, 0.0  ;;  %v1018_v14 = vld [vmem:[#allocation7 + $0x30] sm:$0xff] }
 0x131   : > { %1506 = vmatmul.mubr.f32.vlgmr.msra.gmra.mxu1 %v703_v15  ;;  %1541 = vmatmul.mubr.f32.vlgmr.msra.gmra.mxu0 %v703_v15  ;;  %v1017_v15 = vld [vmem:[#allocation7 + $0x28] sm:$0xff] }
 0x132   : > { %1544 = vmatpush3.msra.mxu1 %v927_v4  ;;  %1057 = vmatpush1.msra.mxu0 %v1042_v32  ;;  %v1044_v32 = vld [vmem:[%s2059_s11] sm:$0x3] }
 0x133   : > { %1545 = vmatprep.subr.mxu1 %v926_v16  ;;  %1058 = vmatprep.subr.mxu0 %v1041_v33 }
 0x134   : > { %1546 = vmatpush3.msra.mxu1 %v926_v16  ;;  %1059 = vmatpush1.msra.mxu0 %v1040_v34  ;;  %v1016_v16 = vld [vmem:[#allocation7 + $0x20] sm:$0xff] }
 0x135   : > { %1547 = vmatprep.subr.mxu1 %v925_v17  ;;  %1060 = vmatprep.subr.mxu0 %v1039_v35 }
 0x136   : > { %1548 = vmatpush3.msra.mxu1 %v925_v17  ;;  %1061 = vmatpush1.msra.mxu0 %v1038_v36  ;;  %v1015_v17 = vld [vmem:[#allocation7 + $0x18] sm:$0xff] }
 0x137   : > { %1549 = vmatprep.subr.mxu1 %v924_v18  ;;  %1062 = vmatprep.subr.mxu0 %v1037_v37 }
 0x138   : > { %1550 = vmatpush3.msra.mxu1 %v924_v18  ;;  %1063 = vmatpush1.msra.mxu0 %v1036_v38  ;;  %v1014_v18 = vld [vmem:[#allocation7 + $0x10] sm:$0xff] }
 0x139   : > { %1551 = vmatprep.subr.mxu1 %v923_v19  ;;  %1064 = vmatprep.subr.mxu0 %v1035_v39 }
 0x13a   : > { %1552 = vmatpush3.msra.mxu1 %v923_v19  ;;  %1065 = vmatpush1.msra.mxu0 %v1034_v40  ;;  %v1013_v19 = vld [vmem:[#allocation7 + $0x8] sm:$0xff] }
 0x13b   : > { %1553 = vmatprep.subr.mxu1 %v922_v20  ;;  %1066 = vmatprep.subr.mxu0 %v1033_v41 }
 0x13c   : > { %1554 = vmatpush3.msra.mxu1 %v922_v20  ;;  %1067 = vmatpush1.msra.mxu0 %v1032_v42  ;;  %v1012_v20 = vld [vmem:[#allocation7] sm:$0xff] }
 0x13d   : > { %1555 = vmatprep.subr.mxu1 %v921_v21  ;;  %1068 = vmatprep.subr.mxu0 %v1031_v43 }
 0x13e   : > { %1556 = vmatpush3.msra.mxu1 %v921_v21  ;;  %1069 = vmatpush1.msra.mxu0 %v1030_v44  ;;  %v1784_v21 = vmov 0.0  }
 0x13f   : > { %1557 = vmatprep.subr.mxu1 %v920_v22  ;;  %1070 = vmatprep.subr.mxu0 %v1029_v45 }
 0x140   : > { %1558 = vmatpush3.msra.mxu1 %v920_v22  ;;  %1071 = vmatpush1.msra.mxu0 %v1028_v46 }
 0x141   : > { %1559 = vmatprep.subr.mxu1 %v919_v23  ;;  %1072 = vmatprep.subr.mxu0 %v1027_v47 }
 0x142   : > { %1560 = vmatpush3.msra.mxu1 %v919_v23  ;;  %1073 = vmatpush1.msra.mxu0 %v1026_v48  ;;  %v1372_v23 = vld [vmem:[%s2057_s9] ss:$0 sm:$0xff] }
 0x143   : > { %1561 = vmatprep.subr.mxu1 %v918_v24  ;;  %1074 = vmatprep.subr.mxu0 %v1025_v49 }
 0x144   : > { %1562 = vmatpush3.msra.mxu1 %v918_v24  ;;  %1075 = vmatpush1.msra.mxu0 %v1024_v50 }
 0x145   : > { %1563 = vmatprep.subr.mxu1 %v917_v25  ;;  %1076 = vmatprep.subr.mxu0 %v1023_v51 }
 0x146   : > { %1564 = vmatpush3.msra.mxu1 %v917_v25  ;;  %1077 = vmatpush1.msra.mxu0 %v1022_v52 }
 0x147   : > { %1565 = vmatprep.subr.mxu1 %v916_v26  ;;  %1078 = vmatprep.subr.mxu0 %v1021_v53 }
 0x148   : > { %1566 = vmatpush3.msra.mxu1 %v916_v26  ;;  %1079 = vmatpush1.msra.mxu0 %v1020_v54 }
 0x149   : > { %1567 = vmatprep.subr.mxu1 %v915_v27  ;;  %1080 = vmatprep.subr.mxu0 %v1019_v55 }
 0x14a   : > { %1568 = vmatpush3.msra.mxu1 %v915_v27  ;;  %1081 = vmatpush1.msra.mxu0 %v1018_v14 }
 0x14b   : > { %1569 = vmatprep.subr.mxu1 %v914_v28  ;;  %1082 = vmatprep.subr.mxu0 %v1017_v15 }
 0x14c   : > { %1570 = vmatpush3.msra.mxu1 %v914_v28  ;;  %1083 = vmatpush1.msra.mxu0 %v1016_v16 }
 0x14d   : > { %1571 = vmatprep.subr.mxu1 %v913_v29  ;;  %1084 = vmatprep.subr.mxu0 %v1015_v17 }
 0x14e   : > { %1572 = vmatpush3.msra.mxu1 %v913_v29  ;;  %1085 = vmatpush1.msra.mxu0 %v1014_v18  ;;  %v1046_v29 = vlaneseq }
 0x14f   : > { %1573 = vmatprep.subr.mxu1 %v912_v30  ;;  %1086 = vmatprep.subr.mxu0 %v1013_v19 }
 0x150   : > { %1574 = vmatpush3.msra.mxu1 %v912_v30  ;;  %1087 = vmatpush1.msra.mxu0 %v1012_v20  ;;  %v1047_v30 = vshrl.u32 %v1046_v29, 7 }
 0x151   : > { %1120 = vmatprep.mubr.f32.mxu0 %v1784_v21 }
 0x152   : > { %v1048_v31 = vsub.s32 0, %v1047_v30  ;;  %v1052_v33 = vsub.s32 1, %v1047_v30 }
 0x154   : > { %v1049_v34 = vrot.slane %v1044_v32, %v1048_v31  ;;  %v1053_v35 = vrot.slane %v1044_v32, %v1052_v33 }
 0x1f1   : > { %v1507_v57 = vpop.f32.mrf.mxu1  ;;  %v1542_v58 = vpop.f32.mrf.mxu0 }
 0x1f2   : > { %v897_v60 = vadd.f32 %v1542_v58, %v1371_v56  ;;  %v799_v2 = vadd.f32 %v1507_v57, %v1370_v59 }
 0x1f3   : > { %v793_v61 = vpop.f32.mrf.mxu1  ;;  %v891_v62 = vpop.f32.mrf.mxu0 }
 0x1f4   : > { %v903_v63 = vmul.f32 0.5, %v897_v60  ;;  %v794_v0 = vadd.f32 %v1370_v59, %v793_v61  ;;  %v892_v1 = vadd.f32 %v1371_v56, %v891_v62  ;;  %1162 = vst [vmem:[%s576_s28 + $0x8] sm:$0xff] %v799_v2  ;;  %1164 = vst [vmem:[%s582_s20 + $0x8] sm:$0xff] %v897_v60 }
 0x1f6   : > { %v906_v3 = vmul.f32 1.442695, %v903_v63  ;;  %1161 = vst [vmem:[%s576_s28] sm:$0xff] %v794_v0  ;;  %v902_v4 = vmul.f32 0.5, %v892_v1  ;;  %1163 = vst [vmem:[%s582_s20] sm:$0xff] %v892_v1  ;;  %s570_s28 = scalar_lea.vmem %s2060_s12, %s1379_s15 }
 0x1f8   : > { %1632 = vpow2.f32 %v906_v3  ;;  %v904_v5 = vmul.f32 1.442695, %v902_v4 }
 0x1fa   : > { %1634 = vpow2.f32 %v904_v5 }
 0x205   : > { %v1633_v7 = vpop.eup %1632 }
 0x206   : > { %v909_v10 = vmul.f32 %v1633_v7, %v901_v6 }
 0x207   : > { %v1635_v9 = vpop.eup %1634 }
 0x208   : > { %v908_v11 = vmul.f32 %v1635_v9, %v900_v8  ;;  %v911_v13 = vadd.f32 %v909_v10, %v799_v2 }
 0x20a   : > { %v910_v12 = vadd.f32 %v908_v11, %v794_v0 }
 0x20c   : > { %1575 = vmatprep.mubr.f32.mxu1 %v910_v12 }
 0x20d   : > { %1576 = vmatmul.mubr.f32.vlgmr.msra.gmra.mxu1 %v911_v13 }
 0x2cd   : > { %v1577_v22 = vpop.f32.mrf.mxu1 }
 0x2ce   : > { %v1007_v26 = vadd.f32 %v1577_v22, %v1372_v23 }
 0x2cf   : > { %v1001_v24 = vpop.f32.mrf.mxu1 }
 0x2d0   : > { %v1002_v25 = vadd.f32 %v1372_v23, %v1001_v24  ;;  %v1011_v28 = vmax.f32 %v1007_v26, 0.0 }
 0x2d2   : > { %v1010_v27 = vmax.f32 %v1002_v25, 0.0 }
 0x2d4   : > { %1121 = vmatmul.mubr.f32.vlgmr.msra.gmra.mxu0 %v1010_v27 }
 0x2d5   : > { %1126 = vmatprep.mubr.f32.mxu0 %v1784_v21 }
 0x2d8   : > { %1127 = vmatmul.mubr.f32.gmra.mxu0 %v1011_v28 }
 0x394   : > { %v1122_v36 = vpop.f32.mrf.mxu0 }
 0x395   : > { %v1123_v37 = vadd.f32 %v1122_v36, %v1049_v34 }
 0x396   : > { %v1124_v38 = vpop.f32.mrf.mxu0 }
 0x397   : > { %v1373_v39 = vmul.f32 -1.442695, %v1123_v37  ;;  %v1125_v40 = vadd.f32 %v1124_v38, %v1053_v35 }
 0x398   : > { %v1128_v41 = vpop.f32.mrf.mxu0 }
 0x399   : > { %1636 = vpow2.f32 %v1373_v39  ;;  %v1374_v42 = vmul.f32 -1.442695, %v1125_v40  ;;  %v1129_v43 = vadd.f32 %v1128_v41, %v1049_v34 }
 0x39a   : > { %v1130_v44 = vpop.f32.mrf.mxu0 }
 0x39b   : > { %1638 = vpow2.f32 %v1374_v42  ;;  %v1375_v45 = vmul.f32 -1.442695, %v1129_v43  ;;  %v1131_v46 = vadd.f32 %v1130_v44, %v1053_v35 }
 0x39d   : > { %1640 = vpow2.f32 %v1375_v45  ;;  %v1376_v47 = vmul.f32 -1.442695, %v1131_v46 }
 0x39f   : > { %1642 = vpow2.f32 %v1376_v47 }
 0x3a6   : > { %v1637_v48 = vpop.eup %1636 }
 0x3a7   : > { %v1145_v49 = vadd.f32 1.0, %v1637_v48 }
 0x3a8   : > { %v1639_v50 = vpop.eup %1638 }
 0x3a9   : > { %1644 = vrcp.f32 %v1145_v49  ;;  %v1146_v51 = vadd.f32 1.0, %v1639_v50 }
 0x3aa   : > { %v1641_v52 = vpop.eup %1640 }
 0x3ab   : > { %1646 = vrcp.f32 %v1146_v51  ;;  %v1147_v53 = vadd.f32 1.0, %v1641_v52 }
 0x3ac   : > { %v1643_v54 = vpop.eup %1642 }
 0x3ad   : > { %1648 = vrcp.f32 %v1147_v53  ;;  %v1148_v55 = vadd.f32 1.0, %v1643_v54 }
 0x3af   : > { %1650 = vrcp.f32 %v1148_v55 }
 0x3b6   : > { %v1645_v56 = vpop.eup %1644 }
 0x3b7   : > { %1157 = vst [vmem:[%s570_s28] sm:$0xff] %v1645_v56 }
 0x3b8   : > { %v1647_v57 = vpop.eup %1646 }
 0x3b9   : > { %1158 = vst [vmem:[%s570_s28 + $0x8] sm:$0xff] %v1647_v57 }
 0x3ba   : > { %v1649_v58 = vpop.eup %1648 }
 0x3bb   : > { %1159 = vst [vmem:[%s570_s28 + $0x10] sm:$0xff] %v1649_v58 }
 0x3bc   : > { %v1651_v59 = vpop.eup %1650 }
 0x3bd   : > { %1160 = vst [vmem:[%s570_s28 + $0x18] sm:$0xff] %v1651_v59 }
 0x3be PF: > { %s28_s29 = sadd.s32 1, %s1774_s29  }
 0x3bf   : > { %p25_p2 = scmp.ge.s32.totalorder %s28_s29, 4  }
 0x3c1   :  { %27 = sbr.rel (!%p25_p2) target bundleno = 3 (0x3), region = 142 }
 0x3c6   :  { %1223 = vsyncpa [#allocation3], 1 }
 0x3c7   :  { %1225 = vsyncpa [#allocation3 + $0x1], 1 }
 0x3c8   :  { %1226 = vsyncpa [#allocation5], 1 }
 0x3c9   :  { %1227 = vsyncpa [#allocation8], 1 }

</bundles_post_ra>
